<compile_context>
chip_gen: v7x
topology: tpu7x:2x2x1
jax: 0.10.0
libtpu: 0.0.40
codegen_flags: <defaults>
</compile_context>

<pallas_src>
import functools

import jax
import jax.numpy as jnp
from jax.experimental import pallas as pl
from jax.experimental.pallas import tpu as pltpu


def _round_up(x, m):
    return ((x + m - 1) // m) * m


def _cdiv(a, b):
    return (a + b - 1) // b


def _vmem_capacity_bytes():
    try:
        info = pltpu.get_tpu_info()
        cap = getattr(info, "vmem_capacity_bytes", None)
        if cap:
            return int(cap)
    except Exception:
        pass
    return 64 * 2**20  # conservative fallback (v7x per-TC physical VMEM)


# ---------------------------------------------------------------------------
# Kernels
# ---------------------------------------------------------------------------
def _lora_kernel_single(x_ref, a_ref, b_ref, o_ref, *, scaling):
    """in_features fits in one block: (x@A)*s @ B straight into o_ref."""
    xa = jnp.dot(x_ref[...], a_ref[...], preferred_element_type=jnp.float32)
    xa = (xa * scaling).astype(b_ref.dtype)
    o_ref[...] = jnp.dot(
        xa, b_ref[...], preferred_element_type=jnp.float32
    ).astype(o_ref.dtype)


def _lora_kernel_ktiled(x_ref, a_ref, b_ref, o_ref, xa_acc, *, scaling,
                        tile_k, k_rem):
    """K-tiled path.

    a_ref is the full, VMEM-resident (k_pad, rank) weight (constant block
    index); we slice the current K slab in-kernel.  If the last K block of x
    is partial (k_rem > 0), its out-of-range lanes are zeroed so garbage
    beyond in_features contributes nothing to the accumulator.
    """
    k = pl.program_id(1)
    last_k = pl.num_programs(1) - 1

    @pl.when(k == 0)
    def _init():
        xa_acc[...] = jnp.zeros_like(xa_acc)

    x_blk = x_ref[...]
    if k_rem:  # static: only emitted when in_features % tile_k != 0
        col = jax.lax.broadcasted_iota(jnp.int32, x_blk.shape, 1)
        valid = jnp.where(k == last_k, k_rem, tile_k)
        x_blk = jnp.where(col < valid, x_blk, jnp.zeros_like(x_blk))

    start = pl.multiple_of(k * tile_k, tile_k)
    a_blk = a_ref[pl.ds(start, tile_k), :]
    xa_acc[...] += jnp.dot(x_blk, a_blk, preferred_element_type=jnp.float32)

    @pl.when(k == last_k)
    def _finalize():
        # Scale the narrow (rank-wide) intermediate, not the wide output.
        xa = (xa_acc[...] * scaling).astype(b_ref.dtype)
        o_ref[...] = jnp.dot(
            xa, b_ref[...], preferred_element_type=jnp.float32
        ).astype(o_ref.dtype)


# ---------------------------------------------------------------------------
# Wrapper
# ---------------------------------------------------------------------------
def lora_forward(x, A, B, *, alpha=1.0, compute_dtype=None):
    """LoRA forward: x @ A @ B * (alpha / rank). x may have leading dims."""
    in_features, rank = A.shape
    rank_b, out_features = B.shape
    assert rank == rank_b
    assert x.shape[-1] == in_features
    scaling = float(alpha) / float(rank)
    out_dtype = x.dtype

    # HBM-bound kernel: default to bf16 compute for f32 activations.
    if compute_dtype is None and x.dtype == jnp.float32:
        compute_dtype = jnp.bfloat16
    if compute_dtype is not None:
        x = x.astype(compute_dtype)
        A = A.astype(compute_dtype)
        B = B.astype(compute_dtype)
    dsize = jnp.dtype(x.dtype).itemsize

    lead = x.shape[:-1]
    n = 1
    for d in lead:
        n *= d
    x2d = x.reshape(n, in_features)

    # Lane-dense output: pad narrow adapters up to 128 output lanes.
    out_cols = out_features if out_features >= 128 else 128
    B_p = (
        B if out_cols == out_features
        else jnp.pad(B, ((0, 0), (0, out_cols - out_features)))
    )

    # ---- K tiling ----------------------------------------------------------
    tile_k = in_features if in_features <= 2048 else 512
    k_tiles = _cdiv(in_features, tile_k)
    k_pad = k_tiles * tile_k
    k_rem = in_features % tile_k          # >0 => partial last K block
    # A is tiny: zero-pad along K so the resident block has no garbage rows.
    A_p = (
        A if k_pad == in_features
        else jnp.pad(A, ((0, k_pad - in_features), (0, 0)))
    )

    # ---- generation-aware budgets -------------------------------------------
    vmem_cap = _vmem_capacity_bytes()
    if vmem_cap <= 96 * 2**20:            # v7x-class: 64 MiB per TC
        tile_budget, limit_cap = 24 * 2**20, 44 * 2**20
    else:                                 # v5e / v6e: 128 MiB
        tile_budget, limit_cap = 48 * 2**20, 96 * 2**20

    # ---- N tiling -----------------------------------------------------------
    tile_n = min(1024, _round_up(n, 8))
    # v7x shards the parallel axis over two TensorCores: prefer >= 2 row tiles
    # when there is enough work to split.
    if n > 256 and _cdiv(n, tile_n) < 2:
        tile_n = _round_up(_cdiv(n, 2), 8)

    def _vmem_est(tn):
        est = 2 * tn * _round_up(tile_k, 128) * dsize                   # x
        est += 2 * tn * _round_up(out_cols, 128) * dsize                # y
        est += 2 * _round_up(k_pad, 8) * _round_up(rank, 128) * dsize   # A
        est += 2 * _round_up(rank, 8) * _round_up(out_cols, 128) * dsize  # B
        est += _round_up(tn, 8) * _round_up(rank, 128) * 4              # acc
        return est

    while tile_n > 8 and _vmem_est(tile_n) > tile_budget:
        tile_n = max(8, _round_up(tile_n // 2, 8))
    n_tiles = _cdiv(n, tile_n)

    vmem_limit = int(min(limit_cap, max(32 * 2**20, 2 * _vmem_est(tile_n))))

    cost = pl.CostEstimate(
        flops=2 * n * in_features * rank + 2 * n * rank * out_cols,
        transcendentals=0,
        bytes_accessed=(
            n * in_features * dsize        # x read once
            + k_pad * rank * dsize         # A resident (fetched once)
            + rank * out_cols * dsize      # B resident
            + n * out_cols * dsize         # y written once
        ),
    )

    if k_tiles == 1:
        kernel = functools.partial(_lora_kernel_single, scaling=scaling)
        grid_spec = pltpu.PrefetchScalarGridSpec(
            num_scalar_prefetch=0,
            grid=(n_tiles,),
            in_specs=[
                pl.BlockSpec((tile_n, in_features), lambda i: (i, 0)),
                pl.BlockSpec((in_features, rank), lambda i: (0, 0)),
                pl.BlockSpec((rank, out_cols), lambda i: (0, 0)),
            ],
            out_specs=pl.BlockSpec((tile_n, out_cols), lambda i: (i, 0)),
        )
        dim_sem = ("parallel",)
    else:
        kernel = functools.partial(
            _lora_kernel_ktiled, scaling=scaling, tile_k=tile_k, k_rem=k_rem)
        grid_spec = pltpu.PrefetchScalarGridSpec(
            num_scalar_prefetch=0,
            grid=(n_tiles, k_tiles),
            in_specs=[
                pl.BlockSpec((tile_n, tile_k), lambda i, k: (i, k)),
                # Full A stays VMEM-resident (constant block index): DMA'd
                # once, sliced per K step in-kernel.
                pl.BlockSpec((k_pad, rank), lambda i, k: (0, 0)),
                pl.BlockSpec((rank, out_cols), lambda i, k: (0, 0)),
            ],
            out_specs=pl.BlockSpec((tile_n, out_cols), lambda i, k: (i, 0)),
            scratch_shapes=[pltpu.VMEM((tile_n, rank), jnp.float32)],
        )
        dim_sem = ("parallel", "arbitrary")

    out = pl.pallas_call(
        kernel,
        out_shape=jax.ShapeDtypeStruct((n, out_cols), out_dtype),
        grid_spec=grid_spec,
        compiler_params=pltpu.CompilerParams(
            dimension_semantics=dim_sem,
            vmem_limit_bytes=vmem_limit,
        ),
        cost_estimate=cost,
    )(x2d, A_p, B_p)

    if out_cols != out_features:
        out = out[:, :out_features]
    return out.reshape(*lead, out_features)


def _lora_ref(x, A, B, scaling):
    hi = jax.lax.Precision.HIGHEST
    xa = jnp.einsum("...i,ir->...r", x, A, precision=hi)
    return jnp.einsum("...r,ro->...o", xa, B, precision=hi) * scaling


if __name__ == "__main__":
    in_features, out_features, rank, alpha = 32, 32, 4, 1.0
    key = jax.random.PRNGKey(0)
    kx, ka, kb, kx3, ka3, kb3 = jax.random.split(key, 6)

    # ---- module-faithful init: A ~ N(0, 0.02), B = zeros --------------------
    x = jax.random.normal(kx, (2, 8, in_features), dtype=jnp.float32)
    A = 0.02 * jax.random.normal(ka, (in_features, rank), dtype=jnp.float32)
    B = jnp.zeros((rank, out_features), dtype=jnp.float32)

    y = lora_forward(x, A, B, alpha=alpha)           # default bf16 compute
    jax.block_until_ready(y)
    assert y.shape == (2, 8, out_features)
    assert y.dtype == x.dtype
    assert jnp.allclose(y, jnp.zeros_like(y)), "B=0 path must yield zeros"

    # ---- nonzero-B, full-precision compute: tight check ---------------------
    B_nz = 0.5 * jax.random.normal(kb, (rank, out_features), dtype=jnp.float32)
    y2 = lora_forward(x, A, B_nz, alpha=alpha, compute_dtype=jnp.float32)
    jax.block_until_ready(y2)
    ref2 = _lora_ref(x, A, B_nz, alpha / rank)
    assert jnp.allclose(y2, ref2, atol=1e-3, rtol=1e-3), \
        "mismatch vs reference (f32 compute)"

    # ---- nonzero-B, default bf16 compute: loose check ------------------------
    y2b = lora_forward(x, A, B_nz, alpha=alpha)
    jax.block_until_ready(y2b)
    assert jnp.allclose(y2b, ref2, atol=1e-2, rtol=5e-2), \
        "mismatch vs reference (bf16 compute)"

    # ---- larger case: K-tiled accumulator, resident A, partial N & K blocks --
    rank3, alpha3 = 8, 16.0
    x3 = jax.random.normal(kx3, (2, 210, 2304), dtype=jnp.float32)   # n = 420
    A3 = 0.02 * jax.random.normal(ka3, (2304, rank3), dtype=jnp.float32)
    B3 = 0.5 * jax.random.normal(kb3, (rank3, 128), dtype=jnp.float32)
    y3 = lora_forward(x3, A3, B3, alpha=alpha3, compute_dtype=jnp.float32)
    jax.block_until_ready(y3)
    assert y3.shape == (2, 210, 128)
    ref3 = _lora_ref(x3, A3, B3, alpha3 / rank3)
    assert jnp.allclose(y3, ref3, atol=2e-3, rtol=2e-3), \
        "mismatch vs reference (K-tiled)"

    print("KERNEL_OK")
</pallas_src>

<mosaic_0001>
module attributes {stable_mosaic.version = 11 : i64} {
  func.func @_lora_kernel_single(%arg0: i32, %arg1: memref<16x32xbf16, #tpu.memory_space<vmem>>, %arg2: memref<32x4xbf16, #tpu.memory_space<vmem>>, %arg3: memref<4x128xbf16, #tpu.memory_space<vmem>>, %arg4: memref<16x128xf32, #tpu.memory_space<vmem>>) attributes {dimension_semantics = [#tpu.dimension_semantics<parallel>], iteration_bounds = array<i64: 1>, scalar_prefetch = 0 : i64, scratch_operands = 0 : i64, tpu.core_type = #tpu.core_type<tc>, window_params = [{transform_indices = @transform_0, window_bounds = array<i64: 16, 32>}, {pipeline_mode = #tpu.pipeline_mode<synchronous>, transform_indices = @transform_1, window_bounds = array<i64: 32, 4>}, {pipeline_mode = #tpu.pipeline_mode<synchronous>, transform_indices = @transform_2, window_bounds = array<i64: 4, 128>}, {transform_indices = @transform_3, window_bounds = array<i64: 16, 128>}]} {
    %c0 = arith.constant 0 : index
    %c0_0 = arith.constant 0 : index
    %0 = vector.load %arg1[%c0, %c0_0] : memref<16x32xbf16, #tpu.memory_space<vmem>>, vector<16x32xbf16>
    %c0_1 = arith.constant 0 : index
    %c0_2 = arith.constant 0 : index
    %1 = vector.load %arg2[%c0_1, %c0_2] : memref<32x4xbf16, #tpu.memory_space<vmem>>, vector<32x4xbf16>
    %cst = arith.constant dense<0.000000e+00> : vector<16x4xf32>
    %2 = tpu.matmul %0, %1, %cst {dimension_numbers = #tpu.dot_dimension_numbers<[1], [0], [0], [1], [0, 0, 1, 1], [], []>} : vector<16x32xbf16>, vector<32x4xbf16>, vector<16x4xf32> -> vector<16x4xf32>
    %cst_3 = arith.constant 2.500000e-01 : f32
    %3 = vector.broadcast %cst_3 : f32 to vector<16x4xf32>
    %4 = arith.mulf %2, %3 : vector<16x4xf32>
    %5 = arith.truncf %4 : vector<16x4xf32> to vector<16x4xbf16>
    %c0_4 = arith.constant 0 : index
    %c0_5 = arith.constant 0 : index
    %6 = vector.load %arg3[%c0_4, %c0_5] : memref<4x128xbf16, #tpu.memory_space<vmem>>, vector<4x128xbf16>
    %cst_6 = arith.constant dense<0.000000e+00> : vector<16x128xf32>
    %7 = tpu.matmul %5, %6, %cst_6 {dimension_numbers = #tpu.dot_dimension_numbers<[1], [0], [0], [1], [0, 0, 1, 1], [], []>} : vector<16x4xbf16>, vector<4x128xbf16>, vector<16x128xf32> -> vector<16x128xf32>
    %c0_7 = arith.constant 0 : index
    %c0_8 = arith.constant 0 : index
    %8 = vector.load %arg4[%c0_7, %c0_8] : memref<16x128xf32, #tpu.memory_space<vmem>>, vector<16x128xf32>
    tpu.vector_store %arg4[%c0_7, %c0_8], %7 {strides = array<i32>} : memref<16x128xf32, #tpu.memory_space<vmem>>, vector<16x128xf32>,
    return
  }
  func.func @transform_0(%arg0: i32) -> (i32, i32) {
    %c0_i32 = arith.constant 0 : i32
    %c0_i32_0 = arith.constant 0 : i32
    return %arg0, %c0_i32 : i32, i32
  }
  func.func @transform_1(%arg0: i32) -> (i32, i32) {
    %c0_i32 = arith.constant 0 : i32
    %c0_i32_0 = arith.constant 0 : i32
    %c0_i32_1 = arith.constant 0 : i32
    return %c0_i32, %c0_i32_0 : i32, i32
  }
  func.func @transform_2(%arg0: i32) -> (i32, i32) {
    %c0_i32 = arith.constant 0 : i32
    %c0_i32_0 = arith.constant 0 : i32
    %c0_i32_1 = arith.constant 0 : i32
    return %c0_i32, %c0_i32_0 : i32, i32
  }
  func.func @transform_3(%arg0: i32) -> (i32, i32) {
    %c0_i32 = arith.constant 0 : i32
    %c0_i32_0 = arith.constant 0 : i32
    return %arg0, %c0_i32 : i32, i32
  }
}

</mosaic_0001>

<bundles_post_ra>
// kernel: tpu_custom_call.1
= control target key start
LH: loop header
LB: loop body
LE: loop exit
PB: predicated region body
PF: predicated region fallthrough
CT: control target
= control target key end

     0   :  { %v211_v1 = vmov 0.0   ;;  %vm212_vm0 = vmmov 0   ;;  %s260_s0 = inlined_call_operand.vmem [shape: bf16[16,32], index: 0, kind: input, shape index: {}]   ;;  %s261_s1 = inlined_call_operand.vmem [shape: bf16[32,4], index: 1, kind: input, shape index: {}]   ;;  %s262_s2 = inlined_call_operand.vmem [shape: bf16[4,128], index: 2, kind: input, shape index: {}]   ;;  %s263_s3 = inlined_call_operand.hbm [shape: f32[16,128], index: 3, kind: output, shape index: {}]  }
   0x1   :  { %v184_v0 = vld [vmem:[%s261_s1] sm:$0xff]   ;;  %165 = vmatprep.subr.bf16.mxu0 %v211_v1  ;;  %173 = vmatprep.subr.bf16.mxu1 %v211_v1  ;;  %v185_v2 = vld [vmem:[%s261_s1 + $0x8] sm:$0xff]  }
   0x2   :  { %166 = vmatpush3.bf16.msra.mxu0 %v184_v0  ;;  %169 = vmatprep.mubr.msk.bf16.mxu0 %vm212_vm0, %v211_v1 }
   0x3   :  { %167 = vmatprep.subr.bf16.mxu0 %v211_v1  ;;  %175 = vmatprep.mubr.msk.bf16.mxu1 %vm212_vm0, %v211_v1 }
   0x4   :  { %8 = vsyncpa [#allocation3], 0  ;;  %v186_v3 = vld [vmem:[%s260_s0] sm:$0xff]   ;;  %vm39_vm1 = vcmask 261120   ;;  %vm92_vm2 = vcmask 1041408   ;;  %vm88_vm3 = vcmask 31744  }
   0x5   :  { %v87_v4 = vld [vmem:[%s262_s2] sm:$0x3]  ;;  %s213_s0 = smov [#allocation2]  }
   0x6   :  { %168 = vmatpush3.bf16.msra.mxu0 %v185_v2  ;;  %v94_v5 = vsel %vm92_vm2, %v87_v4, 0  ;;  %s144_s1 = sshll.u32 %s213_s0, 4  ;;  %s145_s1 = int_to_ptr.vmem [resolvable:$true] %s144_s1 }
   0x7   :  { %174 = vmatpush3.bf16.msra.mxu1 %v94_v5  ;;  %s187_s2 = scalar_lea.vmem %s145_s1, 256  ;;  %p192_p1 = scmp.lt.s32.totalorder %s145_s1, %s145_s1 }
   0x8   :  { %p188_p0 = scmp.ne.s32.totalorder %s145_s1, %s187_s2  ;;  %p193_p2 = scmp.lt.s32.totalorder %s187_s2, %s187_s2 }
   0x9   :  { %170 = vmatmul.mubr.msk.bf16.vlgmr.msra.gmra.mrb[0].mxu0 %vm39_vm1, %v186_v3 }
   0xa   :  { %p194_p3 = por %p193_p2, %p192_p1 }
   0xc   :  { %p195_p4 = pnand %p194_p3, %p188_p0 }
  0xdc   :  { %v77_v6 = vpop.f32.mrb[0].mxu0 }
  0xdd   :  { %v171_v7 = vpop.f32.mrb[1].mxu0  ;;  %v84_v9 = vmul.f32 0.25, %v77_v6 }
  0xde   :  { %v80_v8 = vpop.f32.mrb[2].mxu0 }
  0xdf   :  { %v85_v10 = vmul.f32 0.25, %v80_v8  ;;  %v172_v11 = vpop.f32.mrb[3].mxu0 }
  0xe1   :  { %v86_v12 = vpack.c.bf16 %v85_v10, %v84_v9 }
  0xe3   :  { %176 = vmatmul.mubr.msk.bf16.vlgmr.msra.gmra.mrb[0].mxu1 %vm88_vm3, %v86_v12 }
 0x1b6   :  { %v130_v13 = vpop.f32.mrb[0].mxu1 }
 0x1b7   :  { %137 = vst [vmem:[#allocation2] sm:$0xff] %v130_v13  ;;  %v177_v14 = vpop.f32.mrb[1].mxu1 }
 0x1b8   :  { %v133_v15 = vpop.f32.mrb[2].mxu1 }
 0x1b9   :  { %138 = vst [vmem:[#allocation2 + $0x8] sm:$0xff] %v133_v15  ;;  %v178_v16 = vpop.f32.mrb[3].mxu1 }
 0x1ba   :  { %198 = shalt.err (!%p195_p4)
}
 0x1bb   :  { %s199_s22 = scalar_lea.hbm %s263_s3, 256 }
 0x1bc   :  { %p200_p5 = scmp.ne.s32.totalorder %s263_s3, %s199_s22  ;;  %p203_p6 = scmp.lt.u32.totalorder %s199_s22, %s263_s3 }
 0x1be   :  { %p205_p7 = pnand %p203_p6, %p200_p5 }
 0x1c0   :  { %208 = shalt.err (!%p205_p7)
}
 0x1c1   :  { %s214_s27 = smov 128   ;;  %s215_s28 = smov 8  }
 0x1c2   :  { %150 = dma.vmem_to_hbm [thread:$0]  %s145_s1, 256, %s263_s3, [#allocation3], %s214_s27, %s214_s27, %s215_s28  }
 0x1c3   :  { %209 = dma.done.wait [#allocation3], 256  }
 0x1c4   :  { %210 = vsyncadd [#allocation3], 4294967040 }
 0x1c5   :  { %154 = vsyncpa [#allocation3], 1 }

</bundles_post_ra>
